<compile_context>
chip_gen: v7x
topology: tpu7x:2x2x1
jax: 0.10.0
libtpu: 0.0.40
codegen_flags: <defaults>
</compile_context>

<pallas_src>
import jax
import jax.numpy as jnp
from jax import lax
from jax.experimental import pallas as pl
from jax.experimental.pallas import tpu as pltpu

BN_EPS = 1e-5
MXU_DTYPE = jnp.bfloat16   # MXU operand dtype (accumulation stays f32)


def _softplus(x):
    # Matches torch.nn.Softplus(beta=1, threshold=20)
    return jnp.where(x > 20.0, x, jnp.log1p(jnp.exp(jnp.minimum(x, 20.0))))


def _make_kernel(N, M, F, B):
    E = N * M
    F2 = 2 * F
    UNROLL = 8

    def kernel(nbr_idx_ref,                 # SMEM [E] int32 (slot-major)
               atom_ref,                    # VMEM [N, F] f32
               bond_ref,                    # VMEM [E, B] bf16 (slot-major)
               w_atom_ref,                  # VMEM [F, 4F] bf16 (self|nbr, each filter|core)
               w_bond_ref,                  # VMEM [B, 2F] bf16
               bias_ref,                    # VMEM [1, 2F] f32
               g1_ref, b1_ref,              # VMEM [1, 2F] f32 (bn1)
               g2_ref, b2_ref,              # VMEM [1, F] f32 (bn2)
               out_ref,                     # VMEM [N, F] f32
               nbr_proj_ref,                # scratch [N, 2F] f32 (gather source)
               tot_ref):                    # scratch [E, 2F] f32 (pre-BN totals)
        # ---- fused self + neighbour projection: one [N,F]x[F,4F] MXU push,
        # sliced at vreg-aligned 128-lane boundaries.
        atom_mx = atom_ref[...].astype(MXU_DTYPE)
        proj = jnp.dot(atom_mx, w_atom_ref[...], preferred_element_type=jnp.float32)  # [N, 4F]
        self_term = proj[:, :F2] + bias_ref[...]          # [N, 2F], fc bias folded in
        nbr_proj_ref[...] = proj[:, F2:]                  # [N, 2F]

        # ---- bond projection: one [E,B]x[B,2F] MXU push (lane-dense output).
        bond_proj = jnp.dot(bond_ref[...], w_bond_ref[...],
                            preferred_element_type=jnp.float32)                       # [E, 2F]

        # ---- neighbour row gather: full 128-lane [1,2F] row copies, unrolled x8.
        # TODO(synk): replace with a vectorized sublane dynamic-gather once Mosaic
        # gather lowering supports take-rows for this shape.
        def gather8(blk, carry):
            base = blk * UNROLL
            for u in range(UNROLL):
                e = base + u
                tot_ref[pl.ds(e, 1), :] = nbr_proj_ref[pl.ds(nbr_idx_ref[e], 1), :]
            return carry

        lax.fori_loop(0, E // UNROLL, gather8, 0)
        for e in range(E - E % UNROLL, E):                 # static remainder
            tot_ref[pl.ds(e, 1), :] = nbr_proj_ref[pl.ds(nbr_idx_ref[e], 1), :]

        # ---- pass 1 over slot blocks: add self + bond terms (no [E,2F] tiling
        # of the self term), accumulate BN1 sum / sum-of-squares.
        s1 = jnp.zeros((1, F2), jnp.float32)
        s2 = jnp.zeros((1, F2), jnp.float32)
        for m in range(M):
            t = (tot_ref[pl.ds(m * N, N), :] + self_term
                 + bond_proj[m * N:(m + 1) * N, :])                                   # [N, 2F]
            tot_ref[pl.ds(m * N, N), :] = t
            s1 = s1 + jnp.sum(t, axis=0, keepdims=True)
            s2 = s2 + jnp.sum(t * t, axis=0, keepdims=True)

        # ---- BN1 folded to affine form (training-mode batch stats, biased var).
        inv_e = 1.0 / E
        mean1 = s1 * inv_e
        var1 = jnp.maximum(s2 * inv_e - mean1 * mean1, 0.0)
        scale1 = g1_ref[...] * lax.rsqrt(var1 + BN_EPS)
        shift1 = b1_ref[...] - mean1 * scale1

        # ---- pass 2: normalize, gate sigmoid(filter)*softplus(core), scatter-sum.
        # Halves are split with a single lane roll (XLU) instead of mid-vreg slices;
        # sigmoid reciprocal rides the EUP.
        summed = jnp.zeros((N, F), jnp.float32)
        for m in range(M):
            t = tot_ref[pl.ds(m * N, N), :] * scale1 + shift1                         # [N, 2F]
            filt = pl.reciprocal(1.0 + jnp.exp(-t), approx=True)                      # sigmoid
            core = _softplus(pltpu.roll(t, F, 1))           # core half now in lanes 0..F-1
            summed = summed + (filt * core)[:, :F]

        # ---- BN2 (affine) + residual + softplus2 (atom re-read here, not kept live).
        mean2 = jnp.mean(summed, axis=0, keepdims=True)
        var2 = jnp.maximum(jnp.mean(summed * summed, axis=0, keepdims=True)
                           - mean2 * mean2, 0.0)
        scale2 = g2_ref[...] * lax.rsqrt(var2 + BN_EPS)
        shift2 = b2_ref[...] - mean2 * scale2
        out_ref[...] = _softplus(atom_ref[...] + summed * scale2 + shift2)

    return kernel


def cgcnn_conv(atom_in_fea, nbr_fea, self_idx, nbr_idx, W, b, g1, beta1, g2, beta2):
    """Pallas-backed CGCNNConv forward.  W is the torch Linear weight [2F, 2F+B].

    Assumes the dense CGCNN neighbour list: every atom has the same number of
    neighbours M and self_idx == repeat(arange(N), M) (the aviary loader layout).
    """
    # TODO(synk): very large graphs need an atom-block grid (streamed bond blocks,
    # two-pass BN across grid steps) instead of this single-invocation kernel.
    N, F = atom_in_fea.shape
    E, B = nbr_fea.shape
    assert E % N == 0, "dense neighbour list expected (E = N * M)"
    M = E // N
    F2 = 2 * F

    # Verify the dense neighbour-list assumption before discarding self_idx
    # (skipped when inputs are traced and cannot be concretized).
    try:
        expected = jnp.repeat(jnp.arange(N, dtype=jnp.int32), M)
        dense_ok = bool(jnp.all(self_idx.astype(jnp.int32) == expected))
    except Exception:
        dense_ok = True
    assert dense_ok, "CGCNNConv kernel requires self_idx == repeat(arange(N), M)"

    # ---- parameter / layout prep (plain-JAX glue) ----
    Wt = W.T                                            # [2F+B, 2F]
    # Fused wide-RHS weights: atom -> [self(filter|core) | nbr(filter|core)].
    w_atom = jnp.concatenate([Wt[:F], Wt[F:F2]], axis=1).astype(MXU_DTYPE)   # [F, 4F]
    w_bond = Wt[F2:].astype(MXU_DTYPE)                                       # [B, 2F]

    # Reorder edges from atom-major (i*M + m) to slot-major (m*N + i): the m-th
    # neighbour of every atom forms one contiguous [N, ...] block, so the self
    # gather is the identity and the scatter-sum is a block sum.  BatchNorm
    # statistics are permutation invariant, so semantics are unchanged.
    nbr_fea_slot = (nbr_fea.reshape(N, M, B).transpose(1, 0, 2)
                    .reshape(E, B).astype(MXU_DTYPE))
    nbr_idx_slot = nbr_idx.reshape(N, M).T.reshape(E).astype(jnp.int32)

    f32 = jnp.float32
    bias2d = b.reshape(1, F2).astype(f32)
    g1_2d, b1_2d = g1.reshape(1, F2).astype(f32), beta1.reshape(1, F2).astype(f32)
    g2_2d, b2_2d = g2.reshape(1, F).astype(f32), beta2.reshape(1, F).astype(f32)

    vmem = pl.BlockSpec(memory_space=pltpu.MemorySpace.VMEM)
    smem = pl.BlockSpec(memory_space=pltpu.MemorySpace.SMEM)

    # Scoped-VMEM limit sized to the actual buffers (staging scratch + bond
    # projection + inputs/weights) with 2x headroom, clamped to sane bounds.
    est_bytes = (2 * E * F2 * 4            # tot scratch + bond projection temp
                 + E * B * 2               # bond input (bf16)
                 + N * (4 * F * 4 + F2 * 4 + F * 4)     # proj temp, nbr_proj, atom
                 + (F * 4 * F + B * F2) * 2)            # weights (bf16)
    vmem_limit = int(min(100 * 2 ** 20, max(32 * 2 ** 20, 2 * est_bytes)))

    return pl.pallas_call(
        _make_kernel(N, M, F, B),
        out_shape=jax.ShapeDtypeStruct((N, F), f32),
        in_specs=[smem] + [vmem] * 9,
        out_specs=vmem,
        scratch_shapes=[
            pltpu.VMEM((N, F2), f32),       # neighbour projection (gather source)
            pltpu.VMEM((E, F2), f32),       # staged pre-BN totals
        ],
        compiler_params=pltpu.CompilerParams(vmem_limit_bytes=vmem_limit),
    )(nbr_idx_slot, atom_in_fea.astype(f32), nbr_fea_slot, w_atom, w_bond,
      bias2d, g1_2d, b1_2d, g2_2d, b2_2d)


def cgcnn_conv_reference(atom_in_fea, nbr_fea, self_idx, nbr_idx, W, b, g1, beta1, g2, beta2):
    """Pure-JAX reference mirroring the PyTorch forward exactly (f32)."""
    N, F = atom_in_fea.shape
    atom_nbr_fea = atom_in_fea[nbr_idx]
    atom_self_fea = atom_in_fea[self_idx]
    total = jnp.concatenate([atom_self_fea, atom_nbr_fea, nbr_fea], axis=1) @ W.T + b
    mean1 = total.mean(0)
    var1 = total.var(0)                      # biased
    total = g1 * (total - mean1) / jnp.sqrt(var1 + BN_EPS) + beta1
    filt = jax.nn.sigmoid(total[:, :F])
    core = _softplus(total[:, F:])
    msg = filt * core
    summed = jax.ops.segment_sum(msg, self_idx, num_segments=N)
    mean2 = summed.mean(0)
    var2 = summed.var(0)
    summed = g2 * (summed - mean2) / jnp.sqrt(var2 + BN_EPS) + beta2
    return _softplus(atom_in_fea + summed)


if __name__ == "__main__":
    key = jax.random.PRNGKey(0)
    elem_fea_len, nbr_fea_len = 64, 32
    N, M = 16, 4                    # 16 atoms, 4 neighbours each
    E = N * M                       # 64 edges

    k0, k1, k2, k3, k4 = jax.random.split(key, 5)
    atom_in_fea = jax.random.normal(k0, (N, elem_fea_len), jnp.float32)
    nbr_fea = jax.random.normal(k1, (E, nbr_fea_len), jnp.float32)
    self_idx = jnp.repeat(jnp.arange(N, dtype=jnp.int32), M)   # dense neighbour list
    nbr_idx = jax.random.randint(k2, (E,), 0, N, dtype=jnp.int32)

    # fc_full: Linear(2*elem + nbr, 2*elem) — deterministic PyTorch-style init.
    fan_in = 2 * elem_fea_len + nbr_fea_len
    bound = 1.0 / (fan_in ** 0.5)
    W = jax.random.uniform(k3, (2 * elem_fea_len, fan_in), jnp.float32, -bound, bound)
    b = jax.random.uniform(k4, (2 * elem_fea_len,), jnp.float32, -bound, bound)
    # BatchNorm defaults from __init__: weight=1, bias=0.
    g1 = jnp.ones((2 * elem_fea_len,), jnp.float32)
    beta1 = jnp.zeros((2 * elem_fea_len,), jnp.float32)
    g2 = jnp.ones((elem_fea_len,), jnp.float32)
    beta2 = jnp.zeros((elem_fea_len,), jnp.float32)

    out = cgcnn_conv(atom_in_fea, nbr_fea, self_idx, nbr_idx, W, b, g1, beta1, g2, beta2)
    out = jax.block_until_ready(out)

    ref = cgcnn_conv_reference(atom_in_fea, nbr_fea, self_idx, nbr_idx, W, b, g1, beta1, g2, beta2)
    assert out.shape == (N, elem_fea_len)
    # Tolerance covers bf16 MXU operands + approx EUP reciprocal (reference is exact f32).
    err = float(jnp.max(jnp.abs(out - ref)))
    assert jnp.allclose(out, ref, atol=2e-2, rtol=2e-2), err
    print("KERNEL_OK")
</pallas_src>

<mosaic_0001>
module attributes {stable_mosaic.version = 11 : i64} {
  func.func @kernel(%arg0: memref<64xi32, #tpu.memory_space<smem>>, %arg1: memref<16x64xf32, #tpu.memory_space<vmem>>, %arg2: memref<64x32xbf16, #tpu.memory_space<vmem>>, %arg3: memref<64x256xbf16, #tpu.memory_space<vmem>>, %arg4: memref<32x128xbf16, #tpu.memory_space<vmem>>, %arg5: memref<1x128xf32, #tpu.memory_space<vmem>>, %arg6: memref<1x128xf32, #tpu.memory_space<vmem>>, %arg7: memref<1x128xf32, #tpu.memory_space<vmem>>, %arg8: memref<1x64xf32, #tpu.memory_space<vmem>>, %arg9: memref<1x64xf32, #tpu.memory_space<vmem>>, %arg10: memref<16x64xf32, #tpu.memory_space<vmem>>, %arg11: memref<16x128xf32, #tpu.memory_space<vmem>>, %arg12: memref<64x128xf32, #tpu.memory_space<vmem>>) attributes {dimension_semantics = [], scalar_prefetch = 0 : i64, scratch_operands = 2 : i64, tpu.core_type = #tpu.core_type<tc>} {
    %c0 = arith.constant 0 : index
    %c0_0 = arith.constant 0 : index
    %0 = vector.load %arg1[%c0, %c0_0] : memref<16x64xf32, #tpu.memory_space<vmem>>, vector<16x64xf32>
    %1 = arith.truncf %0 : vector<16x64xf32> to vector<16x64xbf16>
    %c0_1 = arith.constant 0 : index
    %c0_2 = arith.constant 0 : index
    %2 = vector.load %arg3[%c0_1, %c0_2] : memref<64x256xbf16, #tpu.memory_space<vmem>>, vector<64x256xbf16>
    %cst = arith.constant dense<0.000000e+00> : vector<16x256xf32>
    %3 = tpu.matmul %1, %2, %cst {dimension_numbers = #tpu.dot_dimension_numbers<[1], [0], [0], [1], [0, 0, 1, 1], [], []>} : vector<16x64xbf16>, vector<64x256xbf16>, vector<16x256xf32> -> vector<16x256xf32>
    %4 = vector.extract_strided_slice %3 {offsets = [0, 0], sizes = [16, 128], strides = [1, 1]} : vector<16x256xf32> to vector<16x128xf32>
    %c0_3 = arith.constant 0 : index
    %c0_4 = arith.constant 0 : index
    %5 = vector.load %arg5[%c0_3, %c0_4] : memref<1x128xf32, #tpu.memory_space<vmem>>, vector<1x128xf32>
    %6 = vector.broadcast %5 : vector<1x128xf32> to vector<16x128xf32>
    %7 = arith.addf %4, %6 : vector<16x128xf32>
    %8 = vector.extract_strided_slice %3 {offsets = [0, 128], sizes = [16, 128], strides = [1, 1]} : vector<16x256xf32> to vector<16x128xf32>
    %c0_5 = arith.constant 0 : index
    %c0_6 = arith.constant 0 : index
    %9 = vector.load %arg11[%c0_5, %c0_6] : memref<16x128xf32, #tpu.memory_space<vmem>>, vector<16x128xf32>
    tpu.vector_store %arg11[%c0_5, %c0_6], %8 {strides = array<i32>} : memref<16x128xf32, #tpu.memory_space<vmem>>, vector<16x128xf32>,
    %c0_7 = arith.constant 0 : index
    %c0_8 = arith.constant 0 : index
    %10 = vector.load %arg2[%c0_7, %c0_8] : memref<64x32xbf16, #tpu.memory_space<vmem>>, vector<64x32xbf16>
    %c0_9 = arith.constant 0 : index
    %c0_10 = arith.constant 0 : index
    %11 = vector.load %arg4[%c0_9, %c0_10] : memref<32x128xbf16, #tpu.memory_space<vmem>>, vector<32x128xbf16>
    %cst_11 = arith.constant dense<0.000000e+00> : vector<64x128xf32>
    %12 = tpu.matmul %10, %11, %cst_11 {dimension_numbers = #tpu.dot_dimension_numbers<[1], [0], [0], [1], [0, 0, 1, 1], [], []>} : vector<64x32xbf16>, vector<32x128xbf16>, vector<64x128xf32> -> vector<64x128xf32>
    %c0_i32 = arith.constant 0 : i32
    %c8_i32 = arith.constant 8 : i32
    %13 = arith.addi %c0_i32, %c8_i32 : i32
    %c1_i32 = arith.constant 1 : i32
    scf.for %arg13 = %c0_i32 to %13 step %c1_i32  : i32 {
      %c8_i32_88 = arith.constant 8 : i32
      %204 = arith.muli %arg13, %c8_i32_88 : i32
      %c0_i32_89 = arith.constant 0 : i32
      %205 = arith.addi %204, %c0_i32_89 : i32
      %206 = arith.index_cast %205 : i32 to index
      %207 = memref.load %arg0[%206] : memref<64xi32, #tpu.memory_space<smem>>
      %208 = arith.index_cast %207 : i32 to index
      %c0_90 = arith.constant 0 : index
      %209 = vector.load %arg11[%208, %c0_90] : memref<16x128xf32, #tpu.memory_space<vmem>>, vector<1x128xf32>
      %210 = arith.index_cast %205 : i32 to index
      %c0_91 = arith.constant 0 : index
      %211 = vector.load %arg12[%210, %c0_91] : memref<64x128xf32, #tpu.memory_space<vmem>>, vector<1x128xf32>
      tpu.vector_store %arg12[%210, %c0_91], %209 {strides = array<i32>} : memref<64x128xf32, #tpu.memory_space<vmem>>, vector<1x128xf32>,
      %c1_i32_92 = arith.constant 1 : i32
      %212 = arith.addi %204, %c1_i32_92 : i32
      %213 = arith.index_cast %212 : i32 to index
      %214 = memref.load %arg0[%213] : memref<64xi32, #tpu.memory_space<smem>>
      %215 = arith.index_cast %214 : i32 to index
      %c0_93 = arith.constant 0 : index
      %216 = vector.load %arg11[%215, %c0_93] : memref<16x128xf32, #tpu.memory_space<vmem>>, vector<1x128xf32>
      %217 = arith.index_cast %212 : i32 to index
      %c0_94 = arith.constant 0 : index
      %218 = vector.load %arg12[%217, %c0_94] : memref<64x128xf32, #tpu.memory_space<vmem>>, vector<1x128xf32>
      tpu.vector_store %arg12[%217, %c0_94], %216 {strides = array<i32>} : memref<64x128xf32, #tpu.memory_space<vmem>>, vector<1x128xf32>,
      %c2_i32 = arith.constant 2 : i32
      %219 = arith.addi %204, %c2_i32 : i32
      %220 = arith.index_cast %219 : i32 to index
      %221 = memref.load %arg0[%220] : memref<64xi32, #tpu.memory_space<smem>>
      %222 = arith.index_cast %221 : i32 to index
      %c0_95 = arith.constant 0 : index
      %223 = vector.load %arg11[%222, %c0_95] : memref<16x128xf32, #tpu.memory_space<vmem>>, vector<1x128xf32>
      %224 = arith.index_cast %219 : i32 to index
      %c0_96 = arith.constant 0 : index
      %225 = vector.load %arg12[%224, %c0_96] : memref<64x128xf32, #tpu.memory_space<vmem>>, vector<1x128xf32>
      tpu.vector_store %arg12[%224, %c0_96], %223 {strides = array<i32>} : memref<64x128xf32, #tpu.memory_space<vmem>>, vector<1x128xf32>,
      %c3_i32 = arith.constant 3 : i32
      %226 = arith.addi %204, %c3_i32 : i32
      %227 = arith.index_cast %226 : i32 to index
      %228 = memref.load %arg0[%227] : memref<64xi32, #tpu.memory_space<smem>>
      %229 = arith.index_cast %228 : i32 to index
      %c0_97 = arith.constant 0 : index
      %230 = vector.load %arg11[%229, %c0_97] : memref<16x128xf32, #tpu.memory_space<vmem>>, vector<1x128xf32>
      %231 = arith.index_cast %226 : i32 to index
      %c0_98 = arith.constant 0 : index
      %232 = vector.load %arg12[%231, %c0_98] : memref<64x128xf32, #tpu.memory_space<vmem>>, vector<1x128xf32>
      tpu.vector_store %arg12[%231, %c0_98], %230 {strides = array<i32>} : memref<64x128xf32, #tpu.memory_space<vmem>>, vector<1x128xf32>,
      %c4_i32 = arith.constant 4 : i32
      %233 = arith.addi %204, %c4_i32 : i32
      %234 = arith.index_cast %233 : i32 to index
      %235 = memref.load %arg0[%234] : memref<64xi32, #tpu.memory_space<smem>>
      %236 = arith.index_cast %235 : i32 to index
      %c0_99 = arith.constant 0 : index
      %237 = vector.load %arg11[%236, %c0_99] : memref<16x128xf32, #tpu.memory_space<vmem>>, vector<1x128xf32>
      %238 = arith.index_cast %233 : i32 to index
      %c0_100 = arith.constant 0 : index
      %239 = vector.load %arg12[%238, %c0_100] : memref<64x128xf32, #tpu.memory_space<vmem>>, vector<1x128xf32>
      tpu.vector_store %arg12[%238, %c0_100], %237 {strides = array<i32>} : memref<64x128xf32, #tpu.memory_space<vmem>>, vector<1x128xf32>,
      %c5_i32 = arith.constant 5 : i32
      %240 = arith.addi %204, %c5_i32 : i32
      %241 = arith.index_cast %240 : i32 to index
      %242 = memref.load %arg0[%241] : memref<64xi32, #tpu.memory_space<smem>>
      %243 = arith.index_cast %242 : i32 to index
      %c0_101 = arith.constant 0 : index
      %244 = vector.load %arg11[%243, %c0_101] : memref<16x128xf32, #tpu.memory_space<vmem>>, vector<1x128xf32>
      %245 = arith.index_cast %240 : i32 to index
      %c0_102 = arith.constant 0 : index
      %246 = vector.load %arg12[%245, %c0_102] : memref<64x128xf32, #tpu.memory_space<vmem>>, vector<1x128xf32>
      tpu.vector_store %arg12[%245, %c0_102], %244 {strides = array<i32>} : memref<64x128xf32, #tpu.memory_space<vmem>>, vector<1x128xf32>,
      %c6_i32 = arith.constant 6 : i32
      %247 = arith.addi %204, %c6_i32 : i32
      %248 = arith.index_cast %247 : i32 to index
      %249 = memref.load %arg0[%248] : memref<64xi32, #tpu.memory_space<smem>>
      %250 = arith.index_cast %249 : i32 to index
      %c0_103 = arith.constant 0 : index
      %251 = vector.load %arg11[%250, %c0_103] : memref<16x128xf32, #tpu.memory_space<vmem>>, vector<1x128xf32>
      %252 = arith.index_cast %247 : i32 to index
      %c0_104 = arith.constant 0 : index
      %253 = vector.load %arg12[%252, %c0_104] : memref<64x128xf32, #tpu.memory_space<vmem>>, vector<1x128xf32>
      tpu.vector_store %arg12[%252, %c0_104], %251 {strides = array<i32>} : memref<64x128xf32, #tpu.memory_space<vmem>>, vector<1x128xf32>,
      %c7_i32 = arith.constant 7 : i32
      %254 = arith.addi %204, %c7_i32 : i32
      %255 = arith.index_cast %254 : i32 to index
      %256 = memref.load %arg0[%255] : memref<64xi32, #tpu.memory_space<smem>>
      %257 = arith.index_cast %256 : i32 to index
      %c0_105 = arith.constant 0 : index
      %258 = vector.load %arg11[%257, %c0_105] : memref<16x128xf32, #tpu.memory_space<vmem>>, vector<1x128xf32>
      %259 = arith.index_cast %254 : i32 to index
      %c0_106 = arith.constant 0 : index
      %260 = vector.load %arg12[%259, %c0_106] : memref<64x128xf32, #tpu.memory_space<vmem>>, vector<1x128xf32>
      tpu.vector_store %arg12[%259, %c0_106], %258 {strides = array<i32>} : memref<64x128xf32, #tpu.memory_space<vmem>>, vector<1x128xf32>,
    }
    %c8_i32_12 = arith.constant 8 : i32
    %cst_13 = arith.constant 0.000000e+00 : f32
    %14 = vector.broadcast %cst_13 : f32 to vector<1x128xf32>
    %cst_14 = arith.constant 0.000000e+00 : f32
    %15 = vector.broadcast %cst_14 : f32 to vector<1x128xf32>
    %c0_15 = arith.constant 0 : index
    %c0_16 = arith.constant 0 : index
    %16 = vector.load %arg12[%c0_15, %c0_16] : memref<64x128xf32, #tpu.memory_space<vmem>>, vector<16x128xf32>
    %17 = arith.addf %16, %7 : vector<16x128xf32>
    %18 = vector.extract_strided_slice %12 {offsets = [0, 0], sizes = [16, 128], strides = [1, 1]} : vector<64x128xf32> to vector<16x128xf32>
    %19 = arith.addf %17, %18 : vector<16x128xf32>
    %c0_17 = arith.constant 0 : index
    %c0_18 = arith.constant 0 : index
    %20 = vector.load %arg12[%c0_17, %c0_18] : memref<64x128xf32, #tpu.memory_space<vmem>>, vector<16x128xf32>
    tpu.vector_store %arg12[%c0_17, %c0_18], %19 {strides = array<i32>} : memref<64x128xf32, #tpu.memory_space<vmem>>, vector<16x128xf32>,
    %cst_19 = arith.constant dense<0.000000e+00> : vector<128xf32>
    %21 = vector.multi_reduction <add>, %19, %cst_19 [0] : vector<16x128xf32> to vector<128xf32>
    %22 = vector.shape_cast %21 : vector<128xf32> to vector<1x128xf32>
    %23 = arith.addf %14, %22 : vector<1x128xf32>
    %24 = arith.mulf %19, %19 : vector<16x128xf32>
    %cst_20 = arith.constant dense<0.000000e+00> : vector<128xf32>
    %25 = vector.multi_reduction <add>, %24, %cst_20 [0] : vector<16x128xf32> to vector<128xf32>
    %26 = vector.shape_cast %25 : vector<128xf32> to vector<1x128xf32>
    %27 = arith.addf %15, %26 : vector<1x128xf32>
    %c16 = arith.constant 16 : index
    %c0_21 = arith.constant 0 : index
    %28 = vector.load %arg12[%c16, %c0_21] : memref<64x128xf32, #tpu.memory_space<vmem>>, vector<16x128xf32>
    %29 = arith.addf %28, %7 : vector<16x128xf32>
    %30 = vector.extract_strided_slice %12 {offsets = [16, 0], sizes = [16, 128], strides = [1, 1]} : vector<64x128xf32> to vector<16x128xf32>
    %31 = arith.addf %29, %30 : vector<16x128xf32>
    %c16_22 = arith.constant 16 : index
    %c0_23 = arith.constant 0 : index
    %32 = vector.load %arg12[%c16_22, %c0_23] : memref<64x128xf32, #tpu.memory_space<vmem>>, vector<16x128xf32>
    tpu.vector_store %arg12[%c16_22, %c0_23], %31 {strides = array<i32>} : memref<64x128xf32, #tpu.memory_space<vmem>>, vector<16x128xf32>,
    %cst_24 = arith.constant dense<0.000000e+00> : vector<128xf32>
    %33 = vector.multi_reduction <add>, %31, %cst_24 [0] : vector<16x128xf32> to vector<128xf32>
    %34 = vector.shape_cast %33 : vector<128xf32> to vector<1x128xf32>
    %35 = arith.addf %23, %34 : vector<1x128xf32>
    %36 = arith.mulf %31, %31 : vector<16x128xf32>
    %cst_25 = arith.constant dense<0.000000e+00> : vector<128xf32>
    %37 = vector.multi_reduction <add>, %36, %cst_25 [0] : vector<16x128xf32> to vector<128xf32>
    %38 = vector.shape_cast %37 : vector<128xf32> to vector<1x128xf32>
    %39 = arith.addf %27, %38 : vector<1x128xf32>
    %c32 = arith.constant 32 : index
    %c0_26 = arith.constant 0 : index
    %40 = vector.load %arg12[%c32, %c0_26] : memref<64x128xf32, #tpu.memory_space<vmem>>, vector<16x128xf32>
    %41 = arith.addf %40, %7 : vector<16x128xf32>
    %42 = vector.extract_strided_slice %12 {offsets = [32, 0], sizes = [16, 128], strides = [1, 1]} : vector<64x128xf32> to vector<16x128xf32>
    %43 = arith.addf %41, %42 : vector<16x128xf32>
    %c32_27 = arith.constant 32 : index
    %c0_28 = arith.constant 0 : index
    %44 = vector.load %arg12[%c32_27, %c0_28] : memref<64x128xf32, #tpu.memory_space<vmem>>, vector<16x128xf32>
    tpu.vector_store %arg12[%c32_27, %c0_28], %43 {strides = array<i32>} : memref<64x128xf32, #tpu.memory_space<vmem>>, vector<16x128xf32>,
    %cst_29 = arith.constant dense<0.000000e+00> : vector<128xf32>
    %45 = vector.multi_reduction <add>, %43, %cst_29 [0] : vector<16x128xf32> to vector<128xf32>
    %46 = vector.shape_cast %45 : vector<128xf32> to vector<1x128xf32>
    %47 = arith.addf %35, %46 : vector<1x128xf32>
    %48 = arith.mulf %43, %43 : vector<16x128xf32>
    %cst_30 = arith.constant dense<0.000000e+00> : vector<128xf32>
    %49 = vector.multi_reduction <add>, %48, %cst_30 [0] : vector<16x128xf32> to vector<128xf32>
    %50 = vector.shape_cast %49 : vector<128xf32> to vector<1x128xf32>
    %51 = arith.addf %39, %50 : vector<1x128xf32>
    %c48 = arith.constant 48 : index
    %c0_31 = arith.constant 0 : index
    %52 = vector.load %arg12[%c48, %c0_31] : memref<64x128xf32, #tpu.memory_space<vmem>>, vector<16x128xf32>
    %53 = arith.addf %52, %7 : vector<16x128xf32>
    %54 = vector.extract_strided_slice %12 {offsets = [48, 0], sizes = [16, 128], strides = [1, 1]} : vector<64x128xf32> to vector<16x128xf32>
    %55 = arith.addf %53, %54 : vector<16x128xf32>
    %c48_32 = arith.constant 48 : index
    %c0_33 = arith.constant 0 : index
    %56 = vector.load %arg12[%c48_32, %c0_33] : memref<64x128xf32, #tpu.memory_space<vmem>>, vector<16x128xf32>
    tpu.vector_store %arg12[%c48_32, %c0_33], %55 {strides = array<i32>} : memref<64x128xf32, #tpu.memory_space<vmem>>, vector<16x128xf32>,
    %cst_34 = arith.constant dense<0.000000e+00> : vector<128xf32>
    %57 = vector.multi_reduction <add>, %55, %cst_34 [0] : vector<16x128xf32> to vector<128xf32>
    %58 = vector.shape_cast %57 : vector<128xf32> to vector<1x128xf32>
    %59 = arith.addf %47, %58 : vector<1x128xf32>
    %60 = arith.mulf %55, %55 : vector<16x128xf32>
    %cst_35 = arith.constant dense<0.000000e+00> : vector<128xf32>
    %61 = vector.multi_reduction <add>, %60, %cst_35 [0] : vector<16x128xf32> to vector<128xf32>
    %62 = vector.shape_cast %61 : vector<128xf32> to vector<1x128xf32>
    %63 = arith.addf %51, %62 : vector<1x128xf32>
    %cst_36 = arith.constant 1.562500e-02 : f32
    %64 = vector.broadcast %cst_36 : f32 to vector<1x128xf32>
    %65 = arith.mulf %59, %64 : vector<1x128xf32>
    %cst_37 = arith.constant 1.562500e-02 : f32
    %66 = vector.broadcast %cst_37 : f32 to vector<1x128xf32>
    %67 = arith.mulf %63, %66 : vector<1x128xf32>
    %68 = arith.mulf %65, %65 : vector<1x128xf32>
    %69 = arith.subf %67, %68 : vector<1x128xf32>
    %cst_38 = arith.constant 0.000000e+00 : f32
    %70 = vector.broadcast %cst_38 : f32 to vector<1x128xf32>
    %71 = arith.maximumf %69, %70 : vector<1x128xf32>
    %c0_39 = arith.constant 0 : index
    %c0_40 = arith.constant 0 : index
    %72 = vector.load %arg6[%c0_39, %c0_40] : memref<1x128xf32, #tpu.memory_space<vmem>>, vector<1x128xf32>
    %cst_41 = arith.constant 9.99999974E-6 : f32
    %73 = vector.broadcast %cst_41 : f32 to vector<1x128xf32>
    %74 = arith.addf %71, %73 : vector<1x128xf32>
    %75 = math.rsqrt %74 : vector<1x128xf32>
    %76 = arith.mulf %72, %75 : vector<1x128xf32>
    %c0_42 = arith.constant 0 : index
    %c0_43 = arith.constant 0 : index
    %77 = vector.load %arg7[%c0_42, %c0_43] : memref<1x128xf32, #tpu.memory_space<vmem>>, vector<1x128xf32>
    %78 = arith.mulf %65, %76 : vector<1x128xf32>
    %79 = arith.subf %77, %78 : vector<1x128xf32>
    %cst_44 = arith.constant 0.000000e+00 : f32
    %80 = vector.broadcast %cst_44 : f32 to vector<16x64xf32>
    %c0_45 = arith.constant 0 : index
    %c0_46 = arith.constant 0 : index
    %81 = vector.load %arg12[%c0_45, %c0_46] : memref<64x128xf32, #tpu.memory_space<vmem>>, vector<16x128xf32>
    %82 = vector.broadcast %76 : vector<1x128xf32> to vector<16x128xf32>
    %83 = arith.mulf %81, %82 : vector<16x128xf32>
    %84 = vector.broadcast %79 : vector<1x128xf32> to vector<16x128xf32>
    %85 = arith.addf %83, %84 : vector<16x128xf32>
    %cst_47 = arith.constant 0.000000e+00 : f32
    %86 = vector.broadcast %cst_47 : f32 to vector<16x128xf32>
    %87 = arith.subf %86, %85 : vector<16x128xf32>
    %88 = math.exp %87 : vector<16x128xf32>
    %cst_48 = arith.constant 1.000000e+00 : f32
    %89 = vector.broadcast %cst_48 : f32 to vector<16x128xf32>
    %90 = arith.addf %89, %88 : vector<16x128xf32>
    %91 = tpu.reciprocal %90 {approx = true} : vector<16x128xf32> -> vector<16x128xf32>
    %c64_i32 = arith.constant 64 : i32
    %92 = tpu.dynamic_rotate %85 by %c64_i32 dim 1 : vector<16x128xf32>, i32 -> vector<16x128xf32>
    %cst_49 = arith.constant 2.000000e+01 : f32
    %93 = vector.broadcast %cst_49 : f32 to vector<16x128xf32>
    %94 = arith.cmpf ogt, %92, %93 : vector<16x128xf32>
    %cst_50 = arith.constant 2.000000e+01 : f32
    %95 = vector.broadcast %cst_50 : f32 to vector<16x128xf32>
    %96 = arith.minimumf %92, %95 : vector<16x128xf32>
    %97 = math.exp %96 : vector<16x128xf32>
    %98 = math.log1p %97 : vector<16x128xf32>
    %99 = arith.select %94, %92, %98 : vector<16x128xi1>, vector<16x128xf32>
    %100 = arith.mulf %91, %99 : vector<16x128xf32>
    %101 = vector.extract_strided_slice %100 {offsets = [0, 0], sizes = [16, 64], strides = [1, 1]} : vector<16x128xf32> to vector<16x64xf32>
    %102 = arith.addf %80, %101 : vector<16x64xf32>
    %c16_51 = arith.constant 16 : index
    %c0_52 = arith.constant 0 : index
    %103 = vector.load %arg12[%c16_51, %c0_52] : memref<64x128xf32, #tpu.memory_space<vmem>>, vector<16x128xf32>
    %104 = vector.broadcast %76 : vector<1x128xf32> to vector<16x128xf32>
    %105 = arith.mulf %103, %104 : vector<16x128xf32>
    %106 = vector.broadcast %79 : vector<1x128xf32> to vector<16x128xf32>
    %107 = arith.addf %105, %106 : vector<16x128xf32>
    %cst_53 = arith.constant 0.000000e+00 : f32
    %108 = vector.broadcast %cst_53 : f32 to vector<16x128xf32>
    %109 = arith.subf %108, %107 : vector<16x128xf32>
    %110 = math.exp %109 : vector<16x128xf32>
    %cst_54 = arith.constant 1.000000e+00 : f32
    %111 = vector.broadcast %cst_54 : f32 to vector<16x128xf32>
    %112 = arith.addf %111, %110 : vector<16x128xf32>
    %113 = tpu.reciprocal %112 {approx = true} : vector<16x128xf32> -> vector<16x128xf32>
    %c64_i32_55 = arith.constant 64 : i32
    %114 = tpu.dynamic_rotate %107 by %c64_i32_55 dim 1 : vector<16x128xf32>, i32 -> vector<16x128xf32>
    %cst_56 = arith.constant 2.000000e+01 : f32
    %115 = vector.broadcast %cst_56 : f32 to vector<16x128xf32>
    %116 = arith.cmpf ogt, %114, %115 : vector<16x128xf32>
    %cst_57 = arith.constant 2.000000e+01 : f32
    %117 = vector.broadcast %cst_57 : f32 to vector<16x128xf32>
    %118 = arith.minimumf %114, %117 : vector<16x128xf32>
    %119 = math.exp %118 : vector<16x128xf32>
    %120 = math.log1p %119 : vector<16x128xf32>
    %121 = arith.select %116, %114, %120 : vector<16x128xi1>, vector<16x128xf32>
    %122 = arith.mulf %113, %121 : vector<16x128xf32>
    %123 = vector.extract_strided_slice %122 {offsets = [0, 0], sizes = [16, 64], strides = [1, 1]} : vector<16x128xf32> to vector<16x64xf32>
    %124 = arith.addf %102, %123 : vector<16x64xf32>
    %c32_58 = arith.constant 32 : index
    %c0_59 = arith.constant 0 : index
    %125 = vector.load %arg12[%c32_58, %c0_59] : memref<64x128xf32, #tpu.memory_space<vmem>>, vector<16x128xf32>
    %126 = vector.broadcast %76 : vector<1x128xf32> to vector<16x128xf32>
    %127 = arith.mulf %125, %126 : vector<16x128xf32>
    %128 = vector.broadcast %79 : vector<1x128xf32> to vector<16x128xf32>
    %129 = arith.addf %127, %128 : vector<16x128xf32>
    %cst_60 = arith.constant 0.000000e+00 : f32
    %130 = vector.broadcast %cst_60 : f32 to vector<16x128xf32>
    %131 = arith.subf %130, %129 : vector<16x128xf32>
    %132 = math.exp %131 : vector<16x128xf32>
    %cst_61 = arith.constant 1.000000e+00 : f32
    %133 = vector.broadcast %cst_61 : f32 to vector<16x128xf32>
    %134 = arith.addf %133, %132 : vector<16x128xf32>
    %135 = tpu.reciprocal %134 {approx = true} : vector<16x128xf32> -> vector<16x128xf32>
    %c64_i32_62 = arith.constant 64 : i32
    %136 = tpu.dynamic_rotate %129 by %c64_i32_62 dim 1 : vector<16x128xf32>, i32 -> vector<16x128xf32>
    %cst_63 = arith.constant 2.000000e+01 : f32
    %137 = vector.broadcast %cst_63 : f32 to vector<16x128xf32>
    %138 = arith.cmpf ogt, %136, %137 : vector<16x128xf32>
    %cst_64 = arith.constant 2.000000e+01 : f32
    %139 = vector.broadcast %cst_64 : f32 to vector<16x128xf32>
    %140 = arith.minimumf %136, %139 : vector<16x128xf32>
    %141 = math.exp %140 : vector<16x128xf32>
    %142 = math.log1p %141 : vector<16x128xf32>
    %143 = arith.select %138, %136, %142 : vector<16x128xi1>, vector<16x128xf32>
    %144 = arith.mulf %135, %143 : vector<16x128xf32>
    %145 = vector.extract_strided_slice %144 {offsets = [0, 0], sizes = [16, 64], strides = [1, 1]} : vector<16x128xf32> to vector<16x64xf32>
    %146 = arith.addf %124, %145 : vector<16x64xf32>
    %c48_65 = arith.constant 48 : index
    %c0_66 = arith.constant 0 : index
    %147 = vector.load %arg12[%c48_65, %c0_66] : memref<64x128xf32, #tpu.memory_space<vmem>>, vector<16x128xf32>
    %148 = vector.broadcast %76 : vector<1x128xf32> to vector<16x128xf32>
    %149 = arith.mulf %147, %148 : vector<16x128xf32>
    %150 = vector.broadcast %79 : vector<1x128xf32> to vector<16x128xf32>
    %151 = arith.addf %149, %150 : vector<16x128xf32>
    %cst_67 = arith.constant 0.000000e+00 : f32
    %152 = vector.broadcast %cst_67 : f32 to vector<16x128xf32>
    %153 = arith.subf %152, %151 : vector<16x128xf32>
    %154 = math.exp %153 : vector<16x128xf32>
    %cst_68 = arith.constant 1.000000e+00 : f32
    %155 = vector.broadcast %cst_68 : f32 to vector<16x128xf32>
    %156 = arith.addf %155, %154 : vector<16x128xf32>
    %157 = tpu.reciprocal %156 {approx = true} : vector<16x128xf32> -> vector<16x128xf32>
    %c64_i32_69 = arith.constant 64 : i32
    %158 = tpu.dynamic_rotate %151 by %c64_i32_69 dim 1 : vector<16x128xf32>, i32 -> vector<16x128xf32>
    %cst_70 = arith.constant 2.000000e+01 : f32
    %159 = vector.broadcast %cst_70 : f32 to vector<16x128xf32>
    %160 = arith.cmpf ogt, %158, %159 : vector<16x128xf32>
    %cst_71 = arith.constant 2.000000e+01 : f32
    %161 = vector.broadcast %cst_71 : f32 to vector<16x128xf32>
    %162 = arith.minimumf %158, %161 : vector<16x128xf32>
    %163 = math.exp %162 : vector<16x128xf32>
    %164 = math.log1p %163 : vector<16x128xf32>
    %165 = arith.select %160, %158, %164 : vector<16x128xi1>, vector<16x128xf32>
    %166 = arith.mulf %157, %165 : vector<16x128xf32>
    %167 = vector.extract_strided_slice %166 {offsets = [0, 0], sizes = [16, 64], strides = [1, 1]} : vector<16x128xf32> to vector<16x64xf32>
    %168 = arith.addf %146, %167 : vector<16x64xf32>
    %cst_72 = arith.constant dense<0.000000e+00> : vector<64xf32>
    %169 = vector.multi_reduction <add>, %168, %cst_72 [0] : vector<16x64xf32> to vector<64xf32>
    %170 = vector.shape_cast %169 : vector<64xf32> to vector<1x64xf32>
    %cst_73 = arith.constant 1.600000e+01 : f32
    %171 = vector.broadcast %cst_73 : f32 to vector<1x64xf32>
    %172 = arith.divf %170, %171 : vector<1x64xf32>
    %173 = arith.mulf %168, %168 : vector<16x64xf32>
    %cst_74 = arith.constant dense<0.000000e+00> : vector<64xf32>
    %174 = vector.multi_reduction <add>, %173, %cst_74 [0] : vector<16x64xf32> to vector<64xf32>
    %175 = vector.shape_cast %174 : vector<64xf32> to vector<1x64xf32>
    %cst_75 = arith.constant 1.600000e+01 : f32
    %176 = vector.broadcast %cst_75 : f32 to vector<1x64xf32>
    %177 = arith.divf %175, %176 : vector<1x64xf32>
    %178 = arith.mulf %172, %172 : vector<1x64xf32>
    %179 = arith.subf %177, %178 : vector<1x64xf32>
    %cst_76 = arith.constant 0.000000e+00 : f32
    %180 = vector.broadcast %cst_76 : f32 to vector<1x64xf32>
    %181 = arith.maximumf %179, %180 : vector<1x64xf32>
    %c0_77 = arith.constant 0 : index
    %c0_78 = arith.constant 0 : index
    %182 = vector.load %arg8[%c0_77, %c0_78] : memref<1x64xf32, #tpu.memory_space<vmem>>, vector<1x64xf32>
    %cst_79 = arith.constant 9.99999974E-6 : f32
    %183 = vector.broadcast %cst_79 : f32 to vector<1x64xf32>
    %184 = arith.addf %181, %183 : vector<1x64xf32>
    %185 = math.rsqrt %184 : vector<1x64xf32>
    %186 = arith.mulf %182, %185 : vector<1x64xf32>
    %c0_80 = arith.constant 0 : index
    %c0_81 = arith.constant 0 : index
    %187 = vector.load %arg9[%c0_80, %c0_81] : memref<1x64xf32, #tpu.memory_space<vmem>>, vector<1x64xf32>
    %188 = arith.mulf %172, %186 : vector<1x64xf32>
    %189 = arith.subf %187, %188 : vector<1x64xf32>
    %c0_82 = arith.constant 0 : index
    %c0_83 = arith.constant 0 : index
    %190 = vector.load %arg1[%c0_82, %c0_83] : memref<16x64xf32, #tpu.memory_space<vmem>>, vector<16x64xf32>
    %191 = vector.broadcast %186 : vector<1x64xf32> to vector<16x64xf32>
    %192 = arith.mulf %168, %191 : vector<16x64xf32>
    %193 = arith.addf %190, %192 : vector<16x64xf32>
    %194 = vector.broadcast %189 : vector<1x64xf32> to vector<16x64xf32>
    %195 = arith.addf %193, %194 : vector<16x64xf32>
    %cst_84 = arith.constant 2.000000e+01 : f32
    %196 = vector.broadcast %cst_84 : f32 to vector<16x64xf32>
    %197 = arith.cmpf ogt, %195, %196 : vector<16x64xf32>
    %cst_85 = arith.constant 2.000000e+01 : f32
    %198 = vector.broadcast %cst_85 : f32 to vector<16x64xf32>
    %199 = arith.minimumf %195, %198 : vector<16x64xf32>
    %200 = math.exp %199 : vector<16x64xf32>
    %201 = math.log1p %200 : vector<16x64xf32>
    %202 = arith.select %197, %195, %201 : vector<16x64xi1>, vector<16x64xf32>
    %c0_86 = arith.constant 0 : index
    %c0_87 = arith.constant 0 : index
    %203 = vector.load %arg10[%c0_86, %c0_87] : memref<16x64xf32, #tpu.memory_space<vmem>>, vector<16x64xf32>
    tpu.vector_store %arg10[%c0_86, %c0_87], %202 {strides = array<i32>} : memref<16x64xf32, #tpu.memory_space<vmem>>, vector<16x64xf32>,
    return
  }
}

</mosaic_0001>

<bundles_post_ra>
// kernel: tpu_custom_call.1
= control target key start
LH: loop header
LB: loop body
LE: loop exit
PB: predicated region body
PF: predicated region fallthrough
CT: control target
= control target key end

     0   :  { %15 = vsyncpa [#allocation7], 0  ;;  %s1423_s0 = inlined_call_operand.vmem [shape: s32[64], index: 0, kind: input, shape index: {}]   ;;  %s1424_s1 = inlined_call_operand.vmem [shape: f32[16,64], index: 1, kind: input, shape index: {}]   ;;  %s1425_s2 = inlined_call_operand.vmem [shape: bf16[64,32], index: 2, kind: input, shape index: {}]   ;;  %s1426_s3 = inlined_call_operand.hbm [shape: bf16[64,256], index: 3, kind: input, shape index: {}]   ;;  %s1427_s4 = inlined_call_operand.vmem [shape: bf16[32,128], index: 4, kind: input, shape index: {}]   ;;  %s1428_s5 = inlined_call_operand.vmem [shape: f32[1,128], index: 5, kind: input, shape index: {}]   ;;  %s1429_s6 = inlined_call_operand.vmem [shape: f32[1,128], index: 6, kind: input, shape index: {}]   ;;  %s1430_s7 = inlined_call_operand.vmem [shape: f32[1,128], index: 7, kind: input, shape index: {}]   ;;  %s1431_s8 = inlined_call_operand.vmem [shape: f32[1,64], index: 8, kind: input, shape index: {}]   ;;  %s1432_s9 = inlined_call_operand.vmem [shape: f32[1,64], index: 9, kind: input, shape index: {}]   ;;  %s1433_s10 = inlined_call_operand.hbm [shape: f32[16,64], index: 10, kind: output, shape index: {}]  }
   0x1   :  { %16 = vsyncpa [#allocation5], 0 }
   0x2   :  { %17 = vsyncpa [#allocation6], 0  ;;  %s24_s15 = sshll.u32 %s1423_s0, 4  ;;  %s25_s15 = int_to_ptr.vmem [resolvable:$true] %s24_s15 }
   0x3   :  { %s984_s16 = scalar_lea.vmem %s25_s15, 16  ;;  %p989_p1 = scmp.lt.s32.totalorder %s25_s15, %s25_s15 }
   0x4   :  { %p985_p0 = scmp.ne.s32.totalorder %s25_s15, %s984_s16  ;;  %p990_p2 = scmp.lt.s32.totalorder %s984_s16, %s984_s16 }
   0x6   :  { %p991_p3 = por %p990_p2, %p989_p1 }
   0x8   :  { %p992_p4 = pnand %p991_p3, %p985_p0 }
   0xa   :  { %995 = shalt.err (!%p992_p4)
}
   0xb   :  { %s1054_s17 = smov [#allocation4]   ;;  %s1055_s18 = smov [#allocation8]  }
   0xc   :  { %27 = dma.vmem_to_smem %s25_s15, 16, %s1054_s17, [#allocation7]  }
   0xd   :  { %s37_s19 = sshll.u32 %s1055_s18, 4  ;;  %s996_s22 = scalar_lea.hbm %s1426_s3, 1024  ;;  %s38_s19 = int_to_ptr.vmem [resolvable:$true] %s37_s19 }
   0xe   :  { %p997_p5 = scmp.ne.s32.totalorder %s1426_s3, %s996_s22  ;;  %p1000_p6 = scmp.lt.u32.totalorder %s996_s22, %s1426_s3 }
  0x10   :  { %p1002_p7 = pnand %p1000_p6, %p997_p5 }
  0x12   :  { %1005 = shalt.err (!%p1002_p7)
}
  0x13   :  { %s1006_s26 = scalar_lea.vmem %s38_s19, 1024  ;;  %p1011_p9 = scmp.lt.s32.totalorder %s38_s19, %s38_s19 }
  0x14   :  { %p1007_p8 = scmp.ne.s32.totalorder %s38_s19, %s1006_s26  ;;  %p1012_p10 = scmp.lt.s32.totalorder %s1006_s26, %s1006_s26 }
  0x16   :  { %p1013_p11 = por %p1012_p10, %p1011_p9 }
  0x18   :  { %p1014_p12 = pnand %p1013_p11, %p1007_p8 }
  0x1a   :  { %1017 = shalt.err (!%p1014_p12)
}
  0x1b   :  { %s1056_s27 = smov 128   ;;  %s1057_s28 = smov 8  }
  0x1c   :  { %43 = dma.hbm_to_vmem [thread:$0]  %s1426_s3, 1024, %s38_s19, [#allocation5], %s1056_s27, %s1056_s27, %s1057_s28  }
  0x1d   :  { %1044 = dma.done.wait [#allocation7], 16  }
  0x1e   :  { %1045 = vsyncadd [#allocation7], 4294967280 }
  0x1f   :  { %1046 = dma.done.wait [#allocation5], 1024  }
  0x20   :  { %1047 = vsyncadd [#allocation5], 4294966272 }
  0x21   :  { %62 = sfence }
  0x22   :  { %v890_v0 = vld [vmem:[#allocation8 + $0x4] ss:$8 sps:$4 sm:$0xff]   ;;  %v892_v1 = vld [vmem:[%s1427_s4] sm:$0xff]   ;;  %v1058_v2 = vmov 0   ;;  %v893_v3 = vld [vmem:[#allocation8] ss:$8 sps:$4 sm:$0xff]  }
  0x23   :  { %151 = vmatprep.mubr.bf16.mxu0 %v1058_v2  ;;  %119 = vmatprep.subr.bf16.mxu0 %v890_v0  ;;  %v894_v4 = vld [vmem:[#allocation8 + $0x14] ss:$8 sps:$4 sm:$0xff]   ;;  %v897_v6 = vld [vmem:[#allocation8 + $0x10] ss:$8 sps:$4 sm:$0xff]   ;;  %vm217_vm0 = vcmask 261120   ;;  %v906_v12 = vld [vmem:[%s1425_s2 + $0x10] sm:$0xff]  }
  0x24   :  { %863 = vmatprep.subr.bf16.mxu1 %v892_v1  ;;  %120 = vmatpush1.bf16.msra.mxu0 %v893_v3  ;;  %v896_v5 = vld [vmem:[%s1427_s4 + $0x8] sm:$0xff]   ;;  %v898_v7 = vld [vmem:[%s1425_s2] sm:$0xff]   ;;  %v899_v8 = vld [vmem:[#allocation8 + $0x24] ss:$8 sps:$4 sm:$0xff]   ;;  %vm115_vm1 = vcmask 523264  }
  0x25   :  { %864 = vmatpush3.bf16.msra.mxu1 %v892_v1  ;;  %121 = vmatprep.subr.bf16.mxu0 %v894_v4  ;;  %v901_v9 = vld [vmem:[%s1425_s2 + $0x8] sm:$0xff]   ;;  %v902_v10 = vld [vmem:[#allocation8 + $0x20] ss:$8 sps:$4 sm:$0xff]   ;;  %v64_v14 = vld [vmem:[%s1424_s1] sm:$0xff] }
  0x26   :  { %865 = vmatprep.subr.bf16.mxu1 %v896_v5  ;;  %867 = vmatprep.mubr.msk.bf16.mxu1 %vm217_vm0, %v898_v7  ;;  %v903_v11 = vld [vmem:[#allocation8 + $0x34] ss:$8 sps:$4 sm:$0xff]   ;;  %v905_v13 = vld [vmem:[#allocation8 + $0x30] ss:$8 sps:$4 sm:$0xff]   ;;  %v907_v17 = vld [vmem:[%s1425_s2 + $0x18] sm:$0xff]   ;;  %s1186_s2 = smov 0  }
  0x27   :  { %v65_v15 = vld [vmem:[%s1424_s1 + $0x8] sm:$0xff]  ;;  %v831_v22 = vld [vmem:[%s1428_s5] ss:$0 sm:$0xff] }
  0x28   :  { %122 = vmatpush1.bf16.msra.mxu0 %v897_v6  ;;  %v66_v16 = vpack.c.bf16 %v65_v15, %v64_v14 }
  0x29   :  { %866 = vmatpush3.bf16.msra.mxu1 %v896_v5  ;;  %123 = vmatprep.subr.bf16.mxu0 %v899_v8 }
  0x2c   :  { %868 = vmatmul.mubr.msk.bf16.vlgmr.msra.gmra.mrb[0].mxu1 %vm217_vm0, %v901_v9  ;;  %124 = vmatpush1.bf16.msra.mxu0 %v902_v10 }
  0x2d   :  { %871 = vmatprep.mubr.msk.bf16.mxu1 %vm217_vm0, %v906_v12  ;;  %125 = vmatprep.subr.bf16.mxu0 %v903_v11 }
  0x30   :  { %126 = vmatpush1.bf16.msra.mxu0 %v905_v13 }
  0x33   :  { %830 = vmatmul.mubr.msk.bf16.vlgmr.msra.gmra.mrb[0].mxu0 %vm115_vm1, %v66_v16 }
  0x34   :  { %872 = vmatmul.mubr.msk.bf16.gmra.mrb[4].mxu1 %vm217_vm0, %v907_v17 }
  0xff   :  { %v1163_v18 = vpop.f32.mrb[0].mxu1 }
 0x100   :  { %v1165_v19 = vpop.f32.mrb[1].mxu1 }
 0x101   :  { %v1167_v20 = vpop.f32.mrb[2].mxu1 }
 0x102   :  { %v1169_v21 = vpop.f32.mrb[3].mxu1 }
 0x106   :  { %v153_v23 = vpop.f32.mrb[0].mxu0 }
 0x107   :  { %v1174_v24 = vpop.f32.mrb[4].mxu1  ;;  %v1176_v25 = vadd.f32 %v831_v22, %v153_v23  ;;  %v155_v26 = vpop.f32.mrb[1].mxu0 }
 0x108   :  { %v1178_v27 = vpop.f32.mrb[5].mxu1  ;;  %171 = vst [vmem:[#allocation2] sm:$0xff] %v155_v26  ;;  %v157_v28 = vpop.f32.mrb[2].mxu0 }
 0x109   :  { %v1180_v29 = vpop.f32.mrb[6].mxu1  ;;  %v1182_v30 = vadd.f32 %v831_v22, %v157_v28  ;;  %v159_v31 = vpop.f32.mrb[3].mxu0 }
 0x10a   :  { %v1184_v32 = vpop.f32.mrb[7].mxu1  ;;  %172 = vst [vmem:[#allocation2 + $0x8] sm:$0xff] %v159_v31 }
 0x10b LB: > { %s842_s5 = sshll.u32 %s1052_s2, 3  ;;  %s300_s2 = sadd.s32 1, %s1052_s2   ;;  %s1052_s2 = sphi %s1186_s2, %s300_s2  }
 0x10c   : > { %s302_s26 = sld [smem:[#allocation4 + %s842_s5]]  ;;  %s307_s29 = sadd.s32 1, %s842_s5 }
 0x10d   : > { %s313_s30 = sadd.s32 2, %s842_s5  ;;  %s308_s11 = sld [smem:[#allocation4 + %s307_s29]] }
 0x10e   : > { %s314_s12 = sld [smem:[#allocation4 + %s313_s30]]  ;;  %s319_s13 = sadd.s32 3, %s842_s5 }
 0x10f   : > { %s325_s3 = sadd.s32 4, %s842_s5  ;;  %s320_s14 = sld [smem:[#allocation4 + %s319_s13]] }
 0x110   : > { %s326_s15 = sld [smem:[#allocation4 + %s325_s3]]  ;;  %s331_s16 = sadd.s32 5, %s842_s5 }
 0x111   : > { %s337_s17 = sadd.s32 6, %s842_s5  ;;  %s332_s4 = sld [smem:[#allocation4 + %s331_s16]] }
 0x112   : > { %s303_s18 = scalar_lea.vmem [#allocation2], %s302_s26  ;;  %s338_s19 = sld [smem:[#allocation4 + %s337_s17]] }
 0x113   : > { %v304_v33 = vld [vmem:[%s303_s18] sm:$0x1]  ;;  %s343_s20 = sadd.s32 7, %s842_s5  ;;  %s305_s21 = scalar_lea.vmem [#allocation3], %s842_s5 }
 0x114   : > { %306 = vst [vmem:[%s305_s21] sm:$0x1] %v304_v33  ;;  %s309_s22 = scalar_lea.vmem [#allocation2], %s308_s11  ;;  %s315_s23 = scalar_lea.vmem [#allocation2], %s314_s12 }
 0x115   : > { %v310_v34 = vld [vmem:[%s309_s22] sm:$0x1]  ;;  %s344_s24 = sld [smem:[#allocation4 + %s343_s20]]  ;;  %s321_s0 = scalar_lea.vmem [#allocation2], %s320_s14 }
 0x116   : > { %v316_v35 = vld [vmem:[%s315_s23] sm:$0x1]  ;;  %844 = vst [vmem:[%s305_s21 + $0x1] sm:$0x1] %v310_v34  ;;  %s327_s25 = scalar_lea.vmem [#allocation2], %s326_s15  ;;  %p297_p13 = scmp.ge.s32.totalorder %s300_s2, 8  }
 0x117   : > { %846 = vst [vmem:[%s305_s21 + $0x2] sm:$0x1] %v316_v35  ;;  %v322_v36 = vld [vmem:[%s321_s0] sm:$0x1]  ;;  %s333_s29 = scalar_lea.vmem [#allocation2], %s332_s4 }
 0x118   : > { %v328_v37 = vld [vmem:[%s327_s25] sm:$0x1]  ;;  %848 = vst [vmem:[%s305_s21 + $0x3] sm:$0x1] %v322_v36  ;;  %s339_s26 = scalar_lea.vmem [#allocation2], %s338_s19  ;;  %299 = sbr.rel (!%p297_p13) target bundleno = 267 (0x10b), region = 91 }
 0x119   : > { %850 = vst [vmem:[%s305_s21 + $0x4] sm:$0x1] %v328_v37  ;;  %v334_v38 = vld [vmem:[%s333_s29] sm:$0x1] }
 0x11a   : > { %852 = vst [vmem:[%s305_s21 + $0x5] sm:$0x1] %v334_v38  ;;  %v340_v39 = vld [vmem:[%s339_s26] sm:$0x1] }
 0x11b   : > { %854 = vst [vmem:[%s305_s21 + $0x6] sm:$0x1] %v340_v39  ;;  %s345_s5 = scalar_lea.vmem [#allocation2], %s344_s24 }
 0x11c   : > { %v346_v40 = vld [vmem:[%s345_s5] sm:$0x1] }
 0x11d   : > { %856 = vst [vmem:[%s305_s21 + $0x7] sm:$0x1] %v346_v40 }
 0x124   :  { %v349_v41 = vld [vmem:[#allocation3] sm:$0xff]  ;;  %v350_v42 = vld [vmem:[#allocation3 + $0x8] sm:$0xff]  ;;  %v375_v43 = vld [vmem:[#allocation3 + $0x10] sm:$0xff] }
 0x125   :  { %v351_v44 = vadd.f32 %v349_v41, %v1176_v25  ;;  %v352_v45 = vadd.f32 %v350_v42, %v1182_v30  ;;  %v376_v46 = vld [vmem:[#allocation3 + $0x18] sm:$0xff]  ;;  %v377_v47 = vadd.f32 %v375_v43, %v1176_v25  ;;  %v401_v48 = vld [vmem:[#allocation3 + $0x20] sm:$0xff]  ;;  %v402_v49 = vld [vmem:[#allocation3 + $0x28] sm:$0xff] }
 0x126   :  { %v378_v50 = vadd.f32 %v376_v46, %v1182_v30  ;;  %v403_v51 = vadd.f32 %v401_v48, %v1176_v25  ;;  %v404_v52 = vadd.f32 %v402_v49, %v1182_v30  ;;  %v427_v53 = vld [vmem:[#allocation3 + $0x30] sm:$0xff]  ;;  %v428_v54 = vld [vmem:[#allocation3 + $0x38] sm:$0xff] }
 0x127   :  { %v1202_v55 = vadd.f32 %v351_v44, %v1165_v19  ;;  %v1205_v56 = vadd.f32 %v352_v45, %v1169_v21  ;;  %v1208_v57 = vadd.f32 %v1163_v18, %v377_v47  ;;  %v429_v58 = vadd.f32 %v427_v53, %v1176_v25 }
 0x128   :  { %v1212_v59 = vadd.f32 %v1167_v20, %v378_v50  ;;  %v1215_v60 = vadd.f32 %v403_v51, %v1178_v27  ;;  %v1218_v61 = vadd.f32 %v404_v52, %v1184_v32  ;;  %v430_v62 = vadd.f32 %v428_v54, %v1182_v30 }
 0x129   :  { %v357_v63 = vadd.f32 %v1205_v56, %v1202_v55  ;;  %v365_v0 = vmul.f32 %v1202_v55, %v1202_v55  ;;  %v366_v1 = vmul.f32 %v1205_v56, %v1205_v56  ;;  %381 = vst [vmem:[#allocation3 + $0x10] sm:$0xff] %v1208_v57  ;;  %v391_v2 = vmul.f32 %v1208_v57, %v1208_v57 }
 0x12a   :  { %355 = vst [vmem:[#allocation3] sm:$0xff] %v1202_v55  ;;  %356 = vst [vmem:[#allocation3 + $0x8] sm:$0xff] %v1205_v56  ;;  %v383_v3 = vadd.f32 %v1212_v59, %v1208_v57  ;;  %v392_v4 = vmul.f32 %v1212_v59, %v1212_v59  ;;  %v409_v5 = vadd.f32 %v1218_v61, %v1215_v60 }
 0x12b   :  { %v417_v6 = vmul.f32 %v1215_v60, %v1215_v60  ;;  %382 = vst [vmem:[#allocation3 + $0x18] sm:$0xff] %v1212_v59  ;;  %407 = vst [vmem:[#allocation3 + $0x20] sm:$0xff] %v1215_v60  ;;  %v358_v7 = vrot.slane %v357_v63, 4  ;;  %v367_v8 = vadd.f32 %v366_v1, %v365_v0  ;;  %v418_v9 = vmul.f32 %v1218_v61, %v1218_v61 }
 0x12c   :  { %408 = vst [vmem:[#allocation3 + $0x28] sm:$0xff] %v1218_v61  ;;  %v1246_v10 = vadd.f32 %v1174_v24, %v429_v58  ;;  %v384_v11 = vrot.slane %v383_v3, 4  ;;  %v393_v12 = vadd.f32 %v392_v4, %v391_v2  ;;  %v410_v13 = vrot.slane %v409_v5, 4 }
 0x12d   :  { %v1249_v14 = vadd.f32 %v1180_v29, %v430_v62  ;;  %v359_v15 = vadd.f32 %v358_v7, %v357_v63  ;;  %v368_v16 = vrot.slane %v367_v8, 4  ;;  %v419_v17 = vadd.f32 %v418_v9, %v417_v6 }
 0x12e   :  { %v443_v18 = vmul.f32 %v1246_v10, %v1246_v10  ;;  %433 = vst [vmem:[#allocation3 + $0x30] sm:$0xff] %v1246_v10  ;;  %v385_v19 = vadd.f32 %v384_v11, %v383_v3  ;;  %v394_v20 = vrot.slane %v393_v12, 4  ;;  %v411_v21 = vadd.f32 %v410_v13, %v409_v5 }
 0x12f   :  { %v435_v22 = vadd.f32 %v1249_v14, %v1246_v10  ;;  %434 = vst [vmem:[#allocation3 + $0x38] sm:$0xff] %v1249_v14  ;;  %v360_v23 = vrot.slane %v359_v15, 2  ;;  %v369_v24 = vadd.f32 %v368_v16, %v367_v8  ;;  %v420_v25 = vrot.slane %v419_v17, 4 }
 0x130   :  { %v444_v26 = vmul.f32 %v1249_v14, %v1249_v14  ;;  %v386_v27 = vrot.slane %v385_v19, 2  ;;  %v395_v28 = vadd.f32 %v394_v20, %v393_v12  ;;  %v412_v29 = vrot.slane %v411_v21, 2 }
 0x131   :  { %v436_v30 = vrot.slane %v435_v22, 4  ;;  %v361_v31 = vadd.f32 %v360_v23, %v359_v15  ;;  %v370_v32 = vrot.slane %v369_v24, 2  ;;  %v421_v33 = vadd.f32 %v420_v25, %v419_v17  ;;  %v458_v23 = vld [vmem:[%s1429_s6] sm:$0x1]  ;;  %s1059_s6 = smov 64  }
 0x132   :  { %v445_v34 = vadd.f32 %v444_v26, %v443_v18  ;;  %v387_v35 = vadd.f32 %v386_v27, %v385_v19  ;;  %v396_v36 = vrot.slane %v395_v28, 2  ;;  %v413_v37 = vadd.f32 %v412_v29, %v411_v21  ;;  %v462_v27 = vld [vmem:[%s1430_s7] sm:$0x1] }
 0x133   :  { %v437_v38 = vadd.f32 %v436_v30, %v435_v22  ;;  %v362_v39 = vrot.slane %v361_v31, 1  ;;  %v371_v40 = vadd.f32 %v370_v32, %v369_v24  ;;  %v422_v41 = vrot.slane %v421_v33, 2 }
 0x134   :  { %v446_v42 = vrot.slane %v445_v34, 4  ;;  %v388_v43 = vrot.slane %v387_v35, 1  ;;  %v397_v44 = vadd.f32 %v396_v36, %v395_v28  ;;  %v414_v45 = vrot.slane %v413_v37, 1 }
 0x135   :  { %v438_v46 = vrot.slane %v437_v38, 2  ;;  %v363_v47 = vadd.f32 %v362_v39, %v361_v31  ;;  %v372_v48 = vrot.slane %v371_v40, 1  ;;  %v423_v49 = vadd.f32 %v422_v41, %v421_v33 }
 0x136   :  { %v447_v50 = vadd.f32 %v446_v42, %v445_v34  ;;  %v389_v51 = vadd.f32 %v388_v43, %v387_v35  ;;  %v398_v52 = vrot.slane %v397_v44, 1  ;;  %v415_v53 = vadd.f32 %v414_v45, %v413_v37 }
 0x137   :  { %v439_v54 = vadd.f32 %v438_v46, %v437_v38  ;;  %v373_v58 = vadd.f32 %v372_v48, %v371_v40  ;;  %v424_v62 = vrot.slane %v423_v49, 1  ;;  %v468_v21 = vlaneseq }
 0x138   :  { %v448_v63 = vrot.slane %v447_v50, 2  ;;  %v390_v0 = vadd.f32 %v389_v51, %v363_v47  ;;  %v399_v1 = vadd.f32 %v398_v52, %v397_v44 }
 0x139   :  { %v440_v2 = vrot.slane %v439_v54, 1  ;;  %v425_v3 = vadd.f32 %v424_v62, %v423_v49  ;;  %v469_v22 = vshrl.u32 %v468_v21, 7 }
 0x13a   :  { %v449_v4 = vadd.f32 %v448_v63, %v447_v50  ;;  %v400_v5 = vadd.f32 %v399_v1, %v373_v58  ;;  %v416_v6 = vadd.f32 %v415_v53, %v390_v0 }
 0x13b   :  { %v441_v7 = vadd.f32 %v440_v2, %v439_v54  ;;  %v1262_v24 = vsub.s32 0, %v469_v22 }
 0x13c   :  { %v450_v8 = vrot.slane %v449_v4, 1  ;;  %v426_v9 = vadd.f32 %v425_v3, %v400_v5 }
 0x13d   :  { %v442_v11 = vadd.f32 %v441_v7, %v416_v6 }
 0x13e   :  { %v451_v12 = vadd.f32 %v450_v8, %v449_v4 }
 0x13f   :  { %v453_v13 = vmul.f32 0.015625, %v442_v11 }
 0x140   :  { %v452_v15 = vadd.f32 %v451_v12, %v426_v9 }
 0x141   :  { %v455_v16 = vmul.f32 %v453_v13, %v453_v13 }
 0x142   :  { %v454_v17 = vmul.f32 0.015625, %v452_v15 }
 0x144   :  { %v456_v18 = vsub.f32 %v454_v17, %v455_v16 }
 0x146   :  { %v457_v19 = vmax.f32 %v456_v18, 0.0 }
 0x148   :  { %v459_v20 = vadd.f32 1e-05, %v457_v19 }
 0x14a   :  { %908 = vrsqrt.f32 %v459_v20 }
 0x154   :  { %v909_v25 = vpop.eup %908 }
 0x155   :  { %v461_v26 = vmul.f32 %v909_v25, %v458_v23 }
 0x157   :  { %v463_v28 = vmul.f32 %v461_v26, %v453_v13  ;;  %v471_v29 = vrot.slane %v461_v26, %v1262_v24 }
 0x159   :  { %v464_v30 = vsub.f32 %v462_v27, %v463_v28  ;;  %v531_v31 = vmul.f32 %v471_v29, %v1208_v57  ;;  %v473_v32 = vmul.f32 %v471_v29, %v1202_v55  ;;  %v532_v34 = vmul.f32 %v471_v29, %v1212_v59 }
 0x15a   :  { %v474_v35 = vmul.f32 %v471_v29, %v1205_v56  ;;  %v584_v38 = vmul.f32 %v471_v29, %v1218_v61  ;;  %v583_v41 = vmul.f32 %v471_v29, %v1215_v60  ;;  %v636_v57 = vmul.f32 %v471_v29, %v1249_v14 }
 0x15b   :  { %v479_v33 = vrot.slane %v464_v30, %v1262_v24  ;;  %v635_v59 = vmul.f32 %v471_v29, %v1246_v10 }
 0x15d   :  { %v533_v36 = vadd.f32 %v531_v31, %v479_v33  ;;  %v481_v37 = vadd.f32 %v479_v33, %v473_v32  ;;  %v534_v39 = vadd.f32 %v532_v34, %v479_v33  ;;  %v482_v40 = vadd.f32 %v479_v33, %v474_v35 }
 0x15e   :  { %v586_v55 = vadd.f32 %v584_v38, %v479_v33  ;;  %v585_v42 = vadd.f32 %v583_v41, %v479_v33  ;;  %v638_v56 = vadd.f32 %v636_v57, %v479_v33  ;;  %v637_v43 = vadd.f32 %v635_v59, %v479_v33 }
 0x15f   :  { %545 = vrot.lane.b32.xlu1 %v533_v36, %s1059_s6  ;;  %493 = vrot.lane.b32.xlu0 %v481_v37, %s1059_s6  ;;  %v535_v61 = vsub.f32 0.0, %v533_v36  ;;  %v483_v44 = vsub.f32 0.0, %v481_v37  ;;  %v536_v46 = vsub.f32 0.0, %v534_v39  ;;  %v484_v60 = vsub.f32 0.0, %v482_v40 }
 0x160   :  { %v588_v48 = vsub.f32 0.0, %v586_v55  ;;  %v587_v10 = vsub.f32 0.0, %v585_v42  ;;  %v640_v51 = vsub.f32 0.0, %v638_v56  ;;  %v639_v53 = vsub.f32 0.0, %v637_v43 }
 0x161   :  { %v537_v45 = vmul.f32 1.442695, %v535_v61  ;;  %v485_v47 = vmul.f32 1.442695, %v483_v44  ;;  %v539_v14 = vmul.f32 1.442695, %v536_v46 }
 0x162   :  { %v487_v49 = vmul.f32 1.442695, %v484_v60  ;;  %v591_v50 = vmul.f32 1.442695, %v588_v48  ;;  %v589_v52 = vmul.f32 1.442695, %v587_v10 }
 0x163   :  { %547 = vrot.lane.b32.xlu1 %v534_v39, %s1059_s6  ;;  %495 = vrot.lane.b32.xlu0 %v482_v40, %s1059_s6  ;;  %910 = vpow2.f32 %v537_v45  ;;  %v643_v54 = vmul.f32 1.442695, %v640_v51  ;;  %v641_v2 = vmul.f32 1.442695, %v639_v53 }
 0x164   :  { %912 = vpow2.f32 %v485_v47 }
 0x165   :  { %914 = vpow2.f32 %v539_v14 }
 0x166   :  { %916 = vpow2.f32 %v487_v49 }
 0x167   :  { %599 = vrot.lane.b32.xlu1 %v586_v55, %s1059_s6  ;;  %597 = vrot.lane.b32.xlu0 %v585_v42, %s1059_s6  ;;  %918 = vpow2.f32 %v591_v50 }
 0x168   :  { %920 = vpow2.f32 %v589_v52 }
 0x169   :  { %922 = vpow2.f32 %v643_v54 }
 0x16b   :  { %651 = vrot.lane.b32.xlu1 %v638_v56, %s1059_s6  ;;  %649 = vrot.lane.b32.xlu0 %v637_v43, %s1059_s6 }
 0x16d   :  { %v911_v63 = vpop.eup %910 }
 0x16e   :  { %v913_v5 = vpop.eup %912  ;;  %v541_v6 = vadd.f32 1.0, %v911_v63 }
 0x16f   :  { %v915_v9 = vpop.eup %914  ;;  %v489_v13 = vadd.f32 1.0, %v913_v5 }
 0x170   :  { %v917_v16 = vpop.eup %916  ;;  %v542_v17 = vadd.f32 1.0, %v915_v9 }
 0x171   :  { %v919_v21 = vpop.eup %918  ;;  %v490_v25 = vadd.f32 1.0, %v917_v16 }
 0x172   :  { %v594_v27 = vadd.f32 1.0, %v919_v21  ;;  %v921_v30 = vpop.eup %920 }
 0x173   :  { %v923_v32 = vpop.eup %922  ;;  %v593_v36 = vadd.f32 1.0, %v921_v30 }
 0x174   :  { %v646_v42 = vadd.f32 1.0, %v923_v32 }
 0x1d1   :  { %v1277_v58 = vpop.permute.xlu1 %545  ;;  %v1279_v62 = vpop.permute.xlu0 %493 }
 0x1d2   :  { %v551_v0 = vmin.f32 %v1277_v58, 20.0  ;;  %v499_v1 = vmin.f32 %v1279_v62, 20.0  ;;  %vm549_vm2 = vcmp.gt.f32.partialorder %v1277_v58, 20.0  ;;  %vm497_vm3 = vcmp.gt.f32.partialorder %v1279_v62, 20.0 }
 0x1d4   :  { %v553_v3 = vmul.f32 1.442695, %v551_v0  ;;  %v501_v4 = vmul.f32 1.442695, %v499_v1 }
 0x1d5   :  { %v1283_v7 = vpop.permute.xlu1 %547  ;;  %v1285_v8 = vpop.permute.xlu0 %495 }
 0x1d6   :  { %924 = vpow2.f32 %v553_v3  ;;  %v552_v11 = vmin.f32 %v1283_v7, 20.0  ;;  %v500_v12 = vmin.f32 %v1285_v8, 20.0  ;;  %vm550_vm5 = vcmp.gt.f32.partialorder %v1283_v7, 20.0 }
 0x1d7   :  { %926 = vpow2.f32 %v501_v4  ;;  %vm498_vm7 = vcmp.gt.f32.partialorder %v1285_v8, 20.0 }
 0x1d8   :  { %928 = vpow2.f32 %v641_v2  ;;  %v555_v15 = vmul.f32 1.442695, %v552_v11  ;;  %v503_v18 = vmul.f32 1.442695, %v500_v12 }
 0x1d9   :  { %930 = vrcp.f32 %v541_v6  ;;  %v1289_v19 = vpop.permute.xlu1 %599  ;;  %v1291_v20 = vpop.permute.xlu0 %597 }
 0x1da   :  { %932 = vpow2.f32 %v555_v15  ;;  %v604_v22 = vmin.f32 %v1289_v19, 20.0  ;;  %v603_v23 = vmin.f32 %v1291_v20, 20.0  ;;  %vm602_vm11 = vcmp.gt.f32.partialorder %v1289_v19, 20.0 }
 0x1db   :  { %934 = vpow2.f32 %v503_v18  ;;  %vm601_vm12 = vcmp.gt.f32.partialorder %v1291_v20, 20.0 }
 0x1dc   :  { %936 = vrcp.f32 %v489_v13  ;;  %v607_v26 = vmul.f32 1.442695, %v604_v22  ;;  %v605_v28 = vmul.f32 1.442695, %v603_v23 }
 0x1dd   :  { %938 = vrcp.f32 %v542_v17  ;;  %v1295_v29 = vpop.permute.xlu1 %651  ;;  %v1300_v41 = vpop.permute.xlu0 %649 }
 0x1de   :  { %940 = vpow2.f32 %v607_v26  ;;  %v656_v31 = vmin.f32 %v1295_v29, 20.0  ;;  %v655_v45 = vmin.f32 %v1300_v41, 20.0  ;;  %vm654_vm15 = vcmp.gt.f32.partialorder %v1295_v29, 20.0 }
 0x1df   :  { %942 = vpow2.f32 %v605_v28 }
 0x1e0   :  { %v925_v33 = vpop.eup %924  ;;  %944 = vrcp.f32 %v490_v25  ;;  %v659_v34 = vmul.f32 1.442695, %v656_v31  ;;  %v657_v63 = vmul.f32 1.442695, %v655_v45 }
 0x1e1   :  { %v927_v35 = vpop.eup %926  ;;  %946 = vrcp.f32 %v594_v27  ;;  %v557_v37 = vadd.f32 1.0, %v925_v33  ;;  %v560_v43 = vmul.f32 -0.5, %v925_v33  ;;  %v563_v14 = vand.u32 2147483647, %v925_v33 }
 0x1e2   :  { %v929_v38 = vpop.eup %928  ;;  %v505_v39 = vadd.f32 1.0, %v927_v35  ;;  %948 = vpow2.f32 %v659_v34  ;;  %v508_v61 = vmul.f32 -0.5, %v927_v35  ;;  %v511_v49 = vand.u32 2147483647, %v927_v35 }
 0x1e3   :  { %v1298_v40 = vpop.eup %930  ;;  %950 = vlog2.f32 %v557_v37  ;;  %v1310_v60 = vadd.f32 1.0, %v929_v38  ;;  %v561_v52 = vadd.f32 1.0, %v560_v43  ;;  %vm1325_vm4 = vcmp.lt.f32.partialorder %v563_v14, 0.0004427343 }
 0x1e4   :  { %v933_v57 = vpop.eup %932  ;;  %952 = vlog2.f32 %v505_v39  ;;  %v509_v53 = vadd.f32 1.0, %v508_v61  ;;  %vm1330_vm6 = vcmp.lt.f32.partialorder %v511_v49, 0.0004427343 }
 0x1e5   :  { %v1302_v55 = vpop.eup %934  ;;  %954 = vrcp.f32 %v593_v36  ;;  %v566_v59 = vadd.f32 1.0, %v933_v57  ;;  %v569_v50 = vmul.f32 -0.5, %v933_v57  ;;  %v572_v4 = vand.u32 2147483647, %v933_v57 }
 0x1e6   :  { %v937_v56 = vpop.eup %936  ;;  %v514_v44 = vadd.f32 1.0, %v1302_v55  ;;  %v517_v1 = vmul.f32 -0.5, %v1302_v55  ;;  %v562_v16 = vmul.f32 %v925_v33, %v561_v52  ;;  %v510_v17 = vmul.f32 %v927_v35, %v509_v53 }
 0x1e7   :  { %v1306_v46 = vpop.eup %938  ;;  %956 = vlog2.f32 %v566_v59  ;;  %v570_v9 = vadd.f32 1.0, %v569_v50  ;;  %vm1340_vm8 = vcmp.lt.f32.partialorder %v572_v4, 0.0004427343  ;;  %v520_v27 = vand.u32 2147483647, %v1302_v55 }
 0x1e8   :  { %v1308_v47 = vpop.eup %940  ;;  %958 = vlog2.f32 %v514_v44  ;;  %v518_v22 = vadd.f32 1.0, %v517_v1 }
 0x1e9   :  { %v1312_v48 = vpop.eup %942  ;;  %960 = vrcp.f32 %v646_v42  ;;  %v618_v10 = vadd.f32 1.0, %v1308_v47  ;;  %v621_v11 = vmul.f32 -0.5, %v1308_v47  ;;  %v624_v28 = vand.u32 2147483647, %v1308_v47 }
 0x1ea   :  { %v1315_v51 = vpop.eup %944  ;;  %v609_v54 = vadd.f32 1.0, %v1312_v48  ;;  %v612_v23 = vmul.f32 -0.5, %v1312_v48  ;;  %v571_v33 = vmul.f32 %v933_v57, %v570_v9  ;;  %vm521_vm9 = vcmp.lt.f32.partialorder %v520_v27, 0.0004427343 }
 0x1eb   :  { %v1318_v0 = vpop.eup %946  ;;  %962 = vlog2.f32 %v618_v10  ;;  %v622_v34 = vadd.f32 1.0, %v621_v11  ;;  %vm1359_vm10 = vcmp.lt.f32.partialorder %v624_v28, 0.0004427343 }
 0x1ec   :  { %v1323_v2 = vpop.eup %948  ;;  %964 = vlog2.f32 %v609_v54  ;;  %v613_v61 = vadd.f32 1.0, %v612_v23 }
 0x1ed   :  { %v951_v5 = vpop.eup %950  ;;  %v670_v12 = vadd.f32 1.0, %v1323_v2  ;;  %966 = vpow2.f32 %v657_v63  ;;  %v673_v39 = vmul.f32 -0.5, %v1323_v2  ;;  %v676_v3 = vand.u32 2147483647, %v1323_v2 }
 0x1ee   :  { %v953_v13 = vpop.eup %952  ;;  %v559_v15 = vmul.f32 0.6931472, %v951_v5  ;;  %v614_v1 = vmul.f32 %v1312_v48, %v613_v61 }
 0x1ef   :  { %v955_v18 = vpop.eup %954  ;;  %v507_v21 = vmul.f32 0.6931472, %v953_v13  ;;  %968 = vlog2.f32 %v670_v12  ;;  %v674_v53 = vadd.f32 1.0, %v673_v39  ;;  %vm677_vm14 = vcmp.lt.f32.partialorder %v676_v3, 0.0004427343  ;;  %v719_v3 = vld [vmem:[%s1424_s1 + $0x8] sm:$0xff] }
 0x1f0   :  { %v565_v25 = vsel %vm1325_vm4, %v562_v16, %v559_v15 }
 0x1f1   :  { %v957_v30 = vpop.eup %956  ;;  %v575_v31 = vsel %vm549_vm2, %v1277_v58, %v565_v25  ;;  %v513_v32 = vsel %vm1330_vm6, %v510_v17, %v507_v21  ;;  %v519_v58 = vmul.f32 %v1302_v55, %v518_v22  ;;  %v623_v55 = vmul.f32 %v1308_v47, %v622_v34 }
 0x1f2   :  { %v959_v35 = vpop.eup %958  ;;  %v577_v36 = vmul.f32 %v1298_v40, %v575_v31  ;;  %v523_v37 = vsel %vm497_vm3, %v1279_v62, %v513_v32  ;;  %v568_v38 = vmul.f32 0.6931472, %v957_v30  ;;  %v615_v40 = vand.u32 2147483647, %v1312_v48 }
 0x1f3   :  { %v961_v42 = vpop.eup %960  ;;  %v525_v59 = vmul.f32 %v937_v56, %v523_v37  ;;  %v516_v43 = vmul.f32 0.6931472, %v959_v35  ;;  %v675_v11 = vmul.f32 %v1323_v2, %v674_v53  ;;  %vm653_vm2 = vcmp.gt.f32.partialorder %v1300_v41, 20.0  ;;  %v715_v53 = vld [vmem:[%s1432_s9] sm:$0x1] }
 0x1f4   :  { %v574_v57 = vsel %vm1340_vm8, %v571_v33, %v568_v38  ;;  %vm616_vm13 = vcmp.lt.f32.partialorder %v615_v40, 0.0004427343 }
 0x1f5   :  { %v963_v62 = vpop.eup %962  ;;  %v579_v45 = vadd.f32 %v577_v36, %v525_v59  ;;  %v576_v56 = vsel %vm550_vm5, %v1283_v7, %v574_v57  ;;  %v522_v14 = vsel %vm521_vm9, %v519_v58, %v516_v43 }
 0x1f6   :  { %v965_v49 = vpop.eup %964  ;;  %v578_v50 = vmul.f32 %v1306_v46, %v576_v56  ;;  %v524_v10 = vsel %vm498_vm7, %v1285_v8, %v522_v14  ;;  %v620_v52 = vmul.f32 0.6931472, %v963_v62 }
 0x1f7   :  { %v526_v54 = vmul.f32 %v1315_v51, %v524_v10  ;;  %v611_v63 = vmul.f32 0.6931472, %v965_v49  ;;  %v967_v7 = vpop.eup %966 }
 0x1f8   :  { %v626_v47 = vsel %vm1359_vm10, %v623_v55, %v620_v52  ;;  %v661_v51 = vadd.f32 1.0, %v967_v7  ;;  %v664_v21 = vmul.f32 -0.5, %v967_v7 }
 0x1f9   :  { %v969_v46 = vpop.eup %968  ;;  %v580_v8 = vadd.f32 %v578_v50, %v526_v54  ;;  %v628_v4 = vsel %vm602_vm11, %v1289_v19, %v626_v47  ;;  %v617_v5 = vsel %vm616_vm13, %v614_v1, %v611_v63  ;;  %v711_v50 = vld [vmem:[%s1431_s8] sm:$0x1] }
 0x1fa   :  { %v630_v6 = vmul.f32 %v1318_v0, %v628_v4  ;;  %v627_v48 = vsel %vm601_vm12, %v1291_v20, %v617_v5  ;;  %v672_v9 = vmul.f32 0.6931472, %v969_v46  ;;  %970 = vlog2.f32 %v661_v51  ;;  %v718_v1 = vld [vmem:[%s1424_s1] sm:$0xff]  ;;  %s1060_s1 = smov [#allocation9]  }
 0x1fb   :  { %v629_v12 = vmul.f32 %v955_v18, %v627_v48  ;;  %972 = vrcp.f32 %v1310_v60  ;;  %v665_v22 = vadd.f32 1.0, %v664_v21  ;;  %v667_v20 = vand.u32 2147483647, %v967_v7  ;;  %s773_s8 = sshll.u32 %s1060_s1, 4  ;;  %s774_s8 = int_to_ptr.vmem [resolvable:$true] %s773_s8 }
 0x1fc   :  { %v632_v13 = vadd.f32 %v630_v6, %v580_v8  ;;  %v678_v15 = vsel %vm677_vm14, %v675_v11, %v672_v9  ;;  %s1018_s9 = scalar_lea.vmem %s774_s8, 256  ;;  %p1023_p1 = scmp.lt.s32.totalorder %s774_s8, %s774_s8 }
 0x1fd   :  { %v631_v16 = vadd.f32 %v629_v12, %v579_v45  ;;  %v680_v19 = vsel %vm654_vm15, %v1295_v29, %v678_v15  ;;  %v666_v2 = vmul.f32 %v967_v7, %v665_v22  ;;  %vm668_vm0 = vcmp.lt.f32.partialorder %v667_v20, 0.0004427343  ;;  %p1019_p0 = scmp.ne.s32.totalorder %s774_s8, %s1018_s9  ;;  %p1024_p2 = scmp.lt.s32.totalorder %s1018_s9, %s1018_s9 }
 0x1fe   :  { %v682_v17 = vmul.f32 %v961_v42, %v680_v19 }
 0x1ff   :  { %p1025_p3 = por %p1024_p2, %p1023_p1 }
 0x200   :  { %v684_v0 = vadd.f32 %v682_v17, %v632_v13 }
 0x201   :  { %p1026_p4 = pnand %p1025_p3, %p1019_p0 }
 0x202   :  { %v697_v28 = vmul.f32 %v684_v0, %v684_v0  ;;  %v686_v30 = vsel %vm115_vm1, %v684_v0, 0.0 }
 0x204   :  { %v971_v23 = vpop.eup %970  ;;  %v699_v31 = vsel %vm115_vm1, %v697_v28, 0.0 }
 0x205   :  { %v663_v25 = vmul.f32 0.6931472, %v971_v23  ;;  %v973_v18 = vpop.eup %972 }
 0x207   :  { %v669_v26 = vsel %vm668_vm0, %v666_v2, %v663_v25 }
 0x208   :  { %v679_v27 = vsel %vm653_vm2, %v1300_v41, %v669_v26 }
 0x209   :  { %v681_v60 = vmul.f32 %v973_v18, %v679_v27 }
 0x20b   :  { %v683_v29 = vadd.f32 %v681_v60, %v631_v16 }
 0x20d   :  { %v685_v32 = vsel %vm115_vm1, %v683_v29, 0.0  ;;  %v696_v33 = vmul.f32 %v683_v29, %v683_v29 }
 0x20e   :  { %v687_v34 = vadd.f32 %v686_v30, %v685_v32 }
 0x20f   :  { %v698_v35 = vsel %vm115_vm1, %v696_v33, 0.0 }
 0x210   :  { %v688_v36 = vrot.slane %v687_v34, 4  ;;  %v700_v37 = vadd.f32 %v699_v31, %v698_v35 }
 0x212   :  { %v689_v38 = vadd.f32 %v688_v36, %v687_v34  ;;  %v701_v39 = vrot.slane %v700_v37, 4 }
 0x214   :  { %v690_v42 = vrot.slane %v689_v38, 2  ;;  %v702_v59 = vadd.f32 %v701_v39, %v700_v37 }
 0x216   :  { %v691_v41 = vadd.f32 %v690_v42, %v689_v38  ;;  %v703_v43 = vrot.slane %v702_v59, 2 }
 0x218   :  { %v692_v58 = vrot.slane %v691_v41, 1  ;;  %v704_v61 = vadd.f32 %v703_v43, %v702_v59 }
 0x21a   :  { %v693_v57 = vadd.f32 %v692_v58, %v691_v41  ;;  %v705_v44 = vrot.slane %v704_v61, 1 }
 0x21c   :  { %v695_v40 = vmul.f32 0.0625, %v693_v57  ;;  %v706_v62 = vadd.f32 %v705_v44, %v704_v61 }
 0x21e   :  { %v707_v45 = vmul.f32 0.0625, %v706_v62  ;;  %v708_v56 = vmul.f32 %v695_v40, %v695_v40 }
 0x220   :  { %v709_v14 = vsub.f32 %v707_v45, %v708_v56 }
 0x222   :  { %v710_v55 = vmax.f32 %v709_v14, 0.0 }
 0x224   :  { %v712_v49 = vadd.f32 1e-05, %v710_v55 }
 0x226   :  { %974 = vrsqrt.f32 %v712_v49 }
 0x230   :  { %v975_v10 = vpop.eup %974 }
 0x231   :  { %v714_v52 = vmul.f32 %v975_v10, %v711_v50 }
 0x233   :  { %v724_v54 = vrot.slane %v714_v52, %v1262_v24  ;;  %v716_v63 = vmul.f32 %v714_v52, %v695_v40 }
 0x235   :  { %v726_v7 = vmul.f32 %v724_v54, %v683_v29  ;;  %v717_v47 = vsub.f32 %v715_v53, %v716_v63  ;;  %v727_v46 = vmul.f32 %v724_v54, %v684_v0 }
 0x237   :  { %v728_v8 = vadd.f32 %v726_v7, %v718_v1  ;;  %v729_v4 = vadd.f32 %v727_v46, %v719_v3  ;;  %v734_v5 = vrot.slane %v717_v47, %v1262_v24 }
 0x239   :  { %v736_v51 = vadd.f32 %v734_v5, %v728_v8  ;;  %v737_v6 = vadd.f32 %v734_v5, %v729_v4 }
 0x23b   :  { %v740_v48 = vmin.f32 %v736_v51, 20.0  ;;  %v741_v9 = vmin.f32 %v737_v6, 20.0  ;;  %vm738_vm4 = vcmp.gt.f32.partialorder %v736_v51, 20.0  ;;  %vm739_vm6 = vcmp.gt.f32.partialorder %v737_v6, 20.0 }
 0x23d   :  { %v742_v11 = vmul.f32 1.442695, %v740_v48  ;;  %v744_v12 = vmul.f32 1.442695, %v741_v9 }
 0x23f   :  { %976 = vpow2.f32 %v742_v11 }
 0x240   :  { %978 = vpow2.f32 %v744_v12 }
 0x249   :  { %v977_v13 = vpop.eup %976 }
 0x24a   :  { %v979_v15 = vpop.eup %978  ;;  %v746_v16 = vadd.f32 1.0, %v977_v13  ;;  %v749_v17 = vmul.f32 -0.5, %v977_v13  ;;  %v752_v22 = vand.u32 2147483647, %v977_v13 }
 0x24b   :  { %v755_v19 = vadd.f32 1.0, %v979_v15  ;;  %v758_v21 = vmul.f32 -0.5, %v979_v15  ;;  %v761_v24 = vand.u32 2147483647, %v979_v15 }
 0x24c   :  { %980 = vlog2.f32 %v746_v16  ;;  %v750_v0 = vadd.f32 1.0, %v749_v17  ;;  %vm753_vm3 = vcmp.lt.f32.partialorder %v752_v22, 0.0004427343 }
 0x24d   :  { %982 = vlog2.f32 %v755_v19  ;;  %v759_v20 = vadd.f32 1.0, %v758_v21  ;;  %vm762_vm5 = vcmp.lt.f32.partialorder %v761_v24, 0.0004427343 }
 0x24e   :  { %v751_v18 = vmul.f32 %v977_v13, %v750_v0 }
 0x24f   :  { %v760_v27 = vmul.f32 %v979_v15, %v759_v20 }
 0x256   :  { %v981_v23 = vpop.eup %980 }
 0x257   :  { %v983_v25 = vpop.eup %982  ;;  %v748_v2 = vmul.f32 0.6931472, %v981_v23 }
 0x258   :  { %v757_v26 = vmul.f32 0.6931472, %v983_v25 }
 0x259   :  { %v754_v28 = vsel %vm753_vm3, %v751_v18, %v748_v2 }
 0x25a   :  { %v763_v60 = vsel %vm762_vm5, %v760_v27, %v757_v26  ;;  %v764_v30 = vsel %vm738_vm4, %v736_v51, %v754_v28 }
 0x25b   :  { %v765_v29 = vsel %vm739_vm6, %v737_v6, %v763_v60  ;;  %766 = vst.msk [vmem:[#allocation9] sm:$0xff] %vm115_vm1, %v764_v30 }
 0x25c   :  { %767 = vst.msk [vmem:[#allocation9 + $0x8] sm:$0xff] %vm115_vm1, %v765_v29 }
 0x25d   :  { %1029 = shalt.err (!%p1026_p4)
}
 0x25e   :  { %s1030_s20 = scalar_lea.hbm %s1433_s10, 256 }
 0x25f   :  { %p1031_p5 = scmp.ne.s32.totalorder %s1433_s10, %s1030_s20  ;;  %p1034_p6 = scmp.lt.u32.totalorder %s1030_s20, %s1433_s10 }
 0x261   :  { %p1036_p7 = pnand %p1034_p6, %p1031_p5 }
 0x263   :  { %1039 = shalt.err (!%p1036_p7)
}
 0x264   :  { %779 = dma.vmem_to_hbm [thread:$0]  %s774_s8, 256, %s1433_s10, [#allocation6], %s1056_s27, %s1056_s27, %s1057_s28  }
 0x265   :  { %1048 = dma.done.wait [#allocation6], 256  }
 0x266   :  { %1049 = vsyncadd [#allocation6], 4294967040 }
 0x267   :  { %783 = vsyncpa [#allocation5], 1 }
 0x268   :  { %784 = vsyncpa [#allocation6], 1 }
 0x269   :  { %785 = vsyncpa [#allocation7], 1 }

</bundles_post_ra>
